<compile_context>
chip_gen: v6e
topology: v6e:2x2x1
jax: 0.10.0
libtpu: 0.0.40
codegen_flags: <defaults>
</compile_context>

<pallas_src>
import jax
import jax.numpy as jnp
from jax.experimental import pallas as pl
from jax.experimental.pallas import tpu as pltpu


def prompt_embedding_kernel(idx_ref, emb_ref, out_ref):
    # idx_ref: SMEM (N,)  int32  -- flattened virtual-token indices (prefetched)
    # emb_ref: VMEM (V, D)       -- full prompt-embedding table (one resident block)
    # out_ref: VMEM (N, D)       -- lane-dense output slab
    n = out_ref.shape[0]
    # N = B*S is small and static: unrolled row-copy gather. Each step is one
    # (1, D) dynamic-sublane load from the table + one static-row store.
    for i in range(n):
        row = idx_ref[i]
        out_ref[pl.ds(i, 1), :] = emb_ref[pl.ds(row, 1), :]


def prompt_embedding(indices, table):
    """indices: (B, S) int, table: (V, D) -> (B, S, D) rows of table."""
    B, S = indices.shape
    V, D = table.shape
    N = B * S

    # NOTE: PyTorch nn.Embedding raises on out-of-range indices; VMEM refs have
    # no runtime bounds check, so clamp host-side instead of reading OOB rows.
    idx_flat = jnp.clip(indices.astype(jnp.int32).reshape(N), 0, V - 1)

    out_flat = pl.pallas_call(
        prompt_embedding_kernel,
        out_shape=jax.ShapeDtypeStruct((N, D), table.dtype),
        grid_spec=pltpu.PrefetchScalarGridSpec(
            num_scalar_prefetch=1,                                  # indices -> SMEM
            grid=(1,),                                              # single step
            in_specs=[
                pl.BlockSpec((V, D), lambda i, idx: (0, 0)),        # whole table, one fetch
            ],
            out_specs=pl.BlockSpec((N, D), lambda i, idx: (0, 0)),  # one lane-dense slab
        ),
        compiler_params=pltpu.CompilerParams(
            dimension_semantics=("arbitrary",),
        ),
    )(idx_flat, table)

    return out_flat.reshape(B, S, D)


if __name__ == "__main__":
    # Config implied by the module: total_virtual_tokens = num_virtual_tokens *
    # num_transformer_submodules (= V), token_dim = D.
    num_virtual_tokens = 8
    num_transformer_submodules = 2
    total_virtual_tokens = num_virtual_tokens * num_transformer_submodules  # V = 16
    token_dim = 128                                                         # D
    batch = 2

    key = jax.random.PRNGKey(0)

    # Deterministic synthetic nn.Embedding weight (V, D), float32.
    table = jax.random.normal(key, (total_virtual_tokens, token_dim), jnp.float32)

    # Forward input as used in prompt tuning: arange over the virtual tokens,
    # expanded over the batch -> (B, total_virtual_tokens).
    indices = jnp.broadcast_to(
        jnp.arange(total_virtual_tokens, dtype=jnp.int32)[None, :],
        (batch, total_virtual_tokens),
    )

    out = jax.block_until_ready(prompt_embedding(indices, table))

    # Reference: plain embedding lookup.
    ref = jnp.take(table, indices, axis=0)
    assert out.shape == (batch, total_virtual_tokens, token_dim)
    assert out.dtype == jnp.float32
    assert jnp.allclose(out, ref, atol=0.0), "mismatch vs reference gather"

    print("KERNEL_OK")
</pallas_src>

<mosaic_0001>
module attributes {stable_mosaic.version = 11 : i64} {
  func.func @prompt_embedding_kernel(%arg0: i32, %arg1: memref<32xi32, #tpu.memory_space<smem>>, %arg2: memref<16x128xf32, #tpu.memory_space<vmem>>, %arg3: memref<32x128xf32, #tpu.memory_space<vmem>>) attributes {dimension_semantics = [#tpu.dimension_semantics<arbitrary>], iteration_bounds = array<i64: 1>, scalar_prefetch = 1 : i64, scratch_operands = 0 : i64, tpu.core_type = #tpu.core_type<tc>, window_params = [{pipeline_mode = #tpu.pipeline_mode<synchronous>, transform_indices = @transform_0, window_bounds = array<i64: 16, 128>}, {pipeline_mode = #tpu.pipeline_mode<synchronous>, transform_indices = @transform_1, window_bounds = array<i64: 32, 128>}]} {
    %c0 = arith.constant 0 : index
    %0 = memref.load %arg1[%c0] : memref<32xi32, #tpu.memory_space<smem>>
    %1 = arith.index_cast %0 : i32 to index
    %c0_0 = arith.constant 0 : index
    %2 = vector.load %arg2[%1, %c0_0] : memref<16x128xf32, #tpu.memory_space<vmem>>, vector<1x128xf32>
    %c0_1 = arith.constant 0 : index
    %c0_2 = arith.constant 0 : index
    %3 = vector.load %arg3[%c0_1, %c0_2] : memref<32x128xf32, #tpu.memory_space<vmem>>, vector<1x128xf32>
    tpu.vector_store %arg3[%c0_1, %c0_2], %2 {strides = array<i32>} : memref<32x128xf32, #tpu.memory_space<vmem>>, vector<1x128xf32>,
    %c1 = arith.constant 1 : index
    %4 = memref.load %arg1[%c1] : memref<32xi32, #tpu.memory_space<smem>>
    %5 = arith.index_cast %4 : i32 to index
    %c0_3 = arith.constant 0 : index
    %6 = vector.load %arg2[%5, %c0_3] : memref<16x128xf32, #tpu.memory_space<vmem>>, vector<1x128xf32>
    %c1_4 = arith.constant 1 : index
    %c0_5 = arith.constant 0 : index
    %7 = vector.load %arg3[%c1_4, %c0_5] : memref<32x128xf32, #tpu.memory_space<vmem>>, vector<1x128xf32>
    tpu.vector_store %arg3[%c1_4, %c0_5], %6 {strides = array<i32>} : memref<32x128xf32, #tpu.memory_space<vmem>>, vector<1x128xf32>,
    %c2 = arith.constant 2 : index
    %8 = memref.load %arg1[%c2] : memref<32xi32, #tpu.memory_space<smem>>
    %9 = arith.index_cast %8 : i32 to index
    %c0_6 = arith.constant 0 : index
    %10 = vector.load %arg2[%9, %c0_6] : memref<16x128xf32, #tpu.memory_space<vmem>>, vector<1x128xf32>
    %c2_7 = arith.constant 2 : index
    %c0_8 = arith.constant 0 : index
    %11 = vector.load %arg3[%c2_7, %c0_8] : memref<32x128xf32, #tpu.memory_space<vmem>>, vector<1x128xf32>
    tpu.vector_store %arg3[%c2_7, %c0_8], %10 {strides = array<i32>} : memref<32x128xf32, #tpu.memory_space<vmem>>, vector<1x128xf32>,
    %c3 = arith.constant 3 : index
    %12 = memref.load %arg1[%c3] : memref<32xi32, #tpu.memory_space<smem>>
    %13 = arith.index_cast %12 : i32 to index
    %c0_9 = arith.constant 0 : index
    %14 = vector.load %arg2[%13, %c0_9] : memref<16x128xf32, #tpu.memory_space<vmem>>, vector<1x128xf32>
    %c3_10 = arith.constant 3 : index
    %c0_11 = arith.constant 0 : index
    %15 = vector.load %arg3[%c3_10, %c0_11] : memref<32x128xf32, #tpu.memory_space<vmem>>, vector<1x128xf32>
    tpu.vector_store %arg3[%c3_10, %c0_11], %14 {strides = array<i32>} : memref<32x128xf32, #tpu.memory_space<vmem>>, vector<1x128xf32>,
    %c4 = arith.constant 4 : index
    %16 = memref.load %arg1[%c4] : memref<32xi32, #tpu.memory_space<smem>>
    %17 = arith.index_cast %16 : i32 to index
    %c0_12 = arith.constant 0 : index
    %18 = vector.load %arg2[%17, %c0_12] : memref<16x128xf32, #tpu.memory_space<vmem>>, vector<1x128xf32>
    %c4_13 = arith.constant 4 : index
    %c0_14 = arith.constant 0 : index
    %19 = vector.load %arg3[%c4_13, %c0_14] : memref<32x128xf32, #tpu.memory_space<vmem>>, vector<1x128xf32>
    tpu.vector_store %arg3[%c4_13, %c0_14], %18 {strides = array<i32>} : memref<32x128xf32, #tpu.memory_space<vmem>>, vector<1x128xf32>,
    %c5 = arith.constant 5 : index
    %20 = memref.load %arg1[%c5] : memref<32xi32, #tpu.memory_space<smem>>
    %21 = arith.index_cast %20 : i32 to index
    %c0_15 = arith.constant 0 : index
    %22 = vector.load %arg2[%21, %c0_15] : memref<16x128xf32, #tpu.memory_space<vmem>>, vector<1x128xf32>
    %c5_16 = arith.constant 5 : index
    %c0_17 = arith.constant 0 : index
    %23 = vector.load %arg3[%c5_16, %c0_17] : memref<32x128xf32, #tpu.memory_space<vmem>>, vector<1x128xf32>
    tpu.vector_store %arg3[%c5_16, %c0_17], %22 {strides = array<i32>} : memref<32x128xf32, #tpu.memory_space<vmem>>, vector<1x128xf32>,
    %c6 = arith.constant 6 : index
    %24 = memref.load %arg1[%c6] : memref<32xi32, #tpu.memory_space<smem>>
    %25 = arith.index_cast %24 : i32 to index
    %c0_18 = arith.constant 0 : index
    %26 = vector.load %arg2[%25, %c0_18] : memref<16x128xf32, #tpu.memory_space<vmem>>, vector<1x128xf32>
    %c6_19 = arith.constant 6 : index
    %c0_20 = arith.constant 0 : index
    %27 = vector.load %arg3[%c6_19, %c0_20] : memref<32x128xf32, #tpu.memory_space<vmem>>, vector<1x128xf32>
    tpu.vector_store %arg3[%c6_19, %c0_20], %26 {strides = array<i32>} : memref<32x128xf32, #tpu.memory_space<vmem>>, vector<1x128xf32>,
    %c7 = arith.constant 7 : index
    %28 = memref.load %arg1[%c7] : memref<32xi32, #tpu.memory_space<smem>>
    %29 = arith.index_cast %28 : i32 to index
    %c0_21 = arith.constant 0 : index
    %30 = vector.load %arg2[%29, %c0_21] : memref<16x128xf32, #tpu.memory_space<vmem>>, vector<1x128xf32>
    %c7_22 = arith.constant 7 : index
    %c0_23 = arith.constant 0 : index
    %31 = vector.load %arg3[%c7_22, %c0_23] : memref<32x128xf32, #tpu.memory_space<vmem>>, vector<1x128xf32>
    tpu.vector_store %arg3[%c7_22, %c0_23], %30 {strides = array<i32>} : memref<32x128xf32, #tpu.memory_space<vmem>>, vector<1x128xf32>,
    %c8 = arith.constant 8 : index
    %32 = memref.load %arg1[%c8] : memref<32xi32, #tpu.memory_space<smem>>
    %33 = arith.index_cast %32 : i32 to index
    %c0_24 = arith.constant 0 : index
    %34 = vector.load %arg2[%33, %c0_24] : memref<16x128xf32, #tpu.memory_space<vmem>>, vector<1x128xf32>
    %c8_25 = arith.constant 8 : index
    %c0_26 = arith.constant 0 : index
    %35 = vector.load %arg3[%c8_25, %c0_26] : memref<32x128xf32, #tpu.memory_space<vmem>>, vector<1x128xf32>
    tpu.vector_store %arg3[%c8_25, %c0_26], %34 {strides = array<i32>} : memref<32x128xf32, #tpu.memory_space<vmem>>, vector<1x128xf32>,
    %c9 = arith.constant 9 : index
    %36 = memref.load %arg1[%c9] : memref<32xi32, #tpu.memory_space<smem>>
    %37 = arith.index_cast %36 : i32 to index
    %c0_27 = arith.constant 0 : index
    %38 = vector.load %arg2[%37, %c0_27] : memref<16x128xf32, #tpu.memory_space<vmem>>, vector<1x128xf32>
    %c9_28 = arith.constant 9 : index
    %c0_29 = arith.constant 0 : index
    %39 = vector.load %arg3[%c9_28, %c0_29] : memref<32x128xf32, #tpu.memory_space<vmem>>, vector<1x128xf32>
    tpu.vector_store %arg3[%c9_28, %c0_29], %38 {strides = array<i32>} : memref<32x128xf32, #tpu.memory_space<vmem>>, vector<1x128xf32>,
    %c10 = arith.constant 10 : index
    %40 = memref.load %arg1[%c10] : memref<32xi32, #tpu.memory_space<smem>>
    %41 = arith.index_cast %40 : i32 to index
    %c0_30 = arith.constant 0 : index
    %42 = vector.load %arg2[%41, %c0_30] : memref<16x128xf32, #tpu.memory_space<vmem>>, vector<1x128xf32>
    %c10_31 = arith.constant 10 : index
    %c0_32 = arith.constant 0 : index
    %43 = vector.load %arg3[%c10_31, %c0_32] : memref<32x128xf32, #tpu.memory_space<vmem>>, vector<1x128xf32>
    tpu.vector_store %arg3[%c10_31, %c0_32], %42 {strides = array<i32>} : memref<32x128xf32, #tpu.memory_space<vmem>>, vector<1x128xf32>,
    %c11 = arith.constant 11 : index
    %44 = memref.load %arg1[%c11] : memref<32xi32, #tpu.memory_space<smem>>
    %45 = arith.index_cast %44 : i32 to index
    %c0_33 = arith.constant 0 : index
    %46 = vector.load %arg2[%45, %c0_33] : memref<16x128xf32, #tpu.memory_space<vmem>>, vector<1x128xf32>
    %c11_34 = arith.constant 11 : index
    %c0_35 = arith.constant 0 : index
    %47 = vector.load %arg3[%c11_34, %c0_35] : memref<32x128xf32, #tpu.memory_space<vmem>>, vector<1x128xf32>
    tpu.vector_store %arg3[%c11_34, %c0_35], %46 {strides = array<i32>} : memref<32x128xf32, #tpu.memory_space<vmem>>, vector<1x128xf32>,
    %c12 = arith.constant 12 : index
    %48 = memref.load %arg1[%c12] : memref<32xi32, #tpu.memory_space<smem>>
    %49 = arith.index_cast %48 : i32 to index
    %c0_36 = arith.constant 0 : index
    %50 = vector.load %arg2[%49, %c0_36] : memref<16x128xf32, #tpu.memory_space<vmem>>, vector<1x128xf32>
    %c12_37 = arith.constant 12 : index
    %c0_38 = arith.constant 0 : index
    %51 = vector.load %arg3[%c12_37, %c0_38] : memref<32x128xf32, #tpu.memory_space<vmem>>, vector<1x128xf32>
    tpu.vector_store %arg3[%c12_37, %c0_38], %50 {strides = array<i32>} : memref<32x128xf32, #tpu.memory_space<vmem>>, vector<1x128xf32>,
    %c13 = arith.constant 13 : index
    %52 = memref.load %arg1[%c13] : memref<32xi32, #tpu.memory_space<smem>>
    %53 = arith.index_cast %52 : i32 to index
    %c0_39 = arith.constant 0 : index
    %54 = vector.load %arg2[%53, %c0_39] : memref<16x128xf32, #tpu.memory_space<vmem>>, vector<1x128xf32>
    %c13_40 = arith.constant 13 : index
    %c0_41 = arith.constant 0 : index
    %55 = vector.load %arg3[%c13_40, %c0_41] : memref<32x128xf32, #tpu.memory_space<vmem>>, vector<1x128xf32>
    tpu.vector_store %arg3[%c13_40, %c0_41], %54 {strides = array<i32>} : memref<32x128xf32, #tpu.memory_space<vmem>>, vector<1x128xf32>,
    %c14 = arith.constant 14 : index
    %56 = memref.load %arg1[%c14] : memref<32xi32, #tpu.memory_space<smem>>
    %57 = arith.index_cast %56 : i32 to index
    %c0_42 = arith.constant 0 : index
    %58 = vector.load %arg2[%57, %c0_42] : memref<16x128xf32, #tpu.memory_space<vmem>>, vector<1x128xf32>
    %c14_43 = arith.constant 14 : index
    %c0_44 = arith.constant 0 : index
    %59 = vector.load %arg3[%c14_43, %c0_44] : memref<32x128xf32, #tpu.memory_space<vmem>>, vector<1x128xf32>
    tpu.vector_store %arg3[%c14_43, %c0_44], %58 {strides = array<i32>} : memref<32x128xf32, #tpu.memory_space<vmem>>, vector<1x128xf32>,
    %c15 = arith.constant 15 : index
    %60 = memref.load %arg1[%c15] : memref<32xi32, #tpu.memory_space<smem>>
    %61 = arith.index_cast %60 : i32 to index
    %c0_45 = arith.constant 0 : index
    %62 = vector.load %arg2[%61, %c0_45] : memref<16x128xf32, #tpu.memory_space<vmem>>, vector<1x128xf32>
    %c15_46 = arith.constant 15 : index
    %c0_47 = arith.constant 0 : index
    %63 = vector.load %arg3[%c15_46, %c0_47] : memref<32x128xf32, #tpu.memory_space<vmem>>, vector<1x128xf32>
    tpu.vector_store %arg3[%c15_46, %c0_47], %62 {strides = array<i32>} : memref<32x128xf32, #tpu.memory_space<vmem>>, vector<1x128xf32>,
    %c16 = arith.constant 16 : index
    %64 = memref.load %arg1[%c16] : memref<32xi32, #tpu.memory_space<smem>>
    %65 = arith.index_cast %64 : i32 to index
    %c0_48 = arith.constant 0 : index
    %66 = vector.load %arg2[%65, %c0_48] : memref<16x128xf32, #tpu.memory_space<vmem>>, vector<1x128xf32>
    %c16_49 = arith.constant 16 : index
    %c0_50 = arith.constant 0 : index
    %67 = vector.load %arg3[%c16_49, %c0_50] : memref<32x128xf32, #tpu.memory_space<vmem>>, vector<1x128xf32>
    tpu.vector_store %arg3[%c16_49, %c0_50], %66 {strides = array<i32>} : memref<32x128xf32, #tpu.memory_space<vmem>>, vector<1x128xf32>,
    %c17 = arith.constant 17 : index
    %68 = memref.load %arg1[%c17] : memref<32xi32, #tpu.memory_space<smem>>
    %69 = arith.index_cast %68 : i32 to index
    %c0_51 = arith.constant 0 : index
    %70 = vector.load %arg2[%69, %c0_51] : memref<16x128xf32, #tpu.memory_space<vmem>>, vector<1x128xf32>
    %c17_52 = arith.constant 17 : index
    %c0_53 = arith.constant 0 : index
    %71 = vector.load %arg3[%c17_52, %c0_53] : memref<32x128xf32, #tpu.memory_space<vmem>>, vector<1x128xf32>
    tpu.vector_store %arg3[%c17_52, %c0_53], %70 {strides = array<i32>} : memref<32x128xf32, #tpu.memory_space<vmem>>, vector<1x128xf32>,
    %c18 = arith.constant 18 : index
    %72 = memref.load %arg1[%c18] : memref<32xi32, #tpu.memory_space<smem>>
    %73 = arith.index_cast %72 : i32 to index
    %c0_54 = arith.constant 0 : index
    %74 = vector.load %arg2[%73, %c0_54] : memref<16x128xf32, #tpu.memory_space<vmem>>, vector<1x128xf32>
    %c18_55 = arith.constant 18 : index
    %c0_56 = arith.constant 0 : index
    %75 = vector.load %arg3[%c18_55, %c0_56] : memref<32x128xf32, #tpu.memory_space<vmem>>, vector<1x128xf32>
    tpu.vector_store %arg3[%c18_55, %c0_56], %74 {strides = array<i32>} : memref<32x128xf32, #tpu.memory_space<vmem>>, vector<1x128xf32>,
    %c19 = arith.constant 19 : index
    %76 = memref.load %arg1[%c19] : memref<32xi32, #tpu.memory_space<smem>>
    %77 = arith.index_cast %76 : i32 to index
    %c0_57 = arith.constant 0 : index
    %78 = vector.load %arg2[%77, %c0_57] : memref<16x128xf32, #tpu.memory_space<vmem>>, vector<1x128xf32>
    %c19_58 = arith.constant 19 : index
    %c0_59 = arith.constant 0 : index
    %79 = vector.load %arg3[%c19_58, %c0_59] : memref<32x128xf32, #tpu.memory_space<vmem>>, vector<1x128xf32>
    tpu.vector_store %arg3[%c19_58, %c0_59], %78 {strides = array<i32>} : memref<32x128xf32, #tpu.memory_space<vmem>>, vector<1x128xf32>,
    %c20 = arith.constant 20 : index
    %80 = memref.load %arg1[%c20] : memref<32xi32, #tpu.memory_space<smem>>
    %81 = arith.index_cast %80 : i32 to index
    %c0_60 = arith.constant 0 : index
    %82 = vector.load %arg2[%81, %c0_60] : memref<16x128xf32, #tpu.memory_space<vmem>>, vector<1x128xf32>
    %c20_61 = arith.constant 20 : index
    %c0_62 = arith.constant 0 : index
    %83 = vector.load %arg3[%c20_61, %c0_62] : memref<32x128xf32, #tpu.memory_space<vmem>>, vector<1x128xf32>
    tpu.vector_store %arg3[%c20_61, %c0_62], %82 {strides = array<i32>} : memref<32x128xf32, #tpu.memory_space<vmem>>, vector<1x128xf32>,
    %c21 = arith.constant 21 : index
    %84 = memref.load %arg1[%c21] : memref<32xi32, #tpu.memory_space<smem>>
    %85 = arith.index_cast %84 : i32 to index
    %c0_63 = arith.constant 0 : index
    %86 = vector.load %arg2[%85, %c0_63] : memref<16x128xf32, #tpu.memory_space<vmem>>, vector<1x128xf32>
    %c21_64 = arith.constant 21 : index
    %c0_65 = arith.constant 0 : index
    %87 = vector.load %arg3[%c21_64, %c0_65] : memref<32x128xf32, #tpu.memory_space<vmem>>, vector<1x128xf32>
    tpu.vector_store %arg3[%c21_64, %c0_65], %86 {strides = array<i32>} : memref<32x128xf32, #tpu.memory_space<vmem>>, vector<1x128xf32>,
    %c22 = arith.constant 22 : index
    %88 = memref.load %arg1[%c22] : memref<32xi32, #tpu.memory_space<smem>>
    %89 = arith.index_cast %88 : i32 to index
    %c0_66 = arith.constant 0 : index
    %90 = vector.load %arg2[%89, %c0_66] : memref<16x128xf32, #tpu.memory_space<vmem>>, vector<1x128xf32>
    %c22_67 = arith.constant 22 : index
    %c0_68 = arith.constant 0 : index
    %91 = vector.load %arg3[%c22_67, %c0_68] : memref<32x128xf32, #tpu.memory_space<vmem>>, vector<1x128xf32>
    tpu.vector_store %arg3[%c22_67, %c0_68], %90 {strides = array<i32>} : memref<32x128xf32, #tpu.memory_space<vmem>>, vector<1x128xf32>,
    %c23 = arith.constant 23 : index
    %92 = memref.load %arg1[%c23] : memref<32xi32, #tpu.memory_space<smem>>
    %93 = arith.index_cast %92 : i32 to index
    %c0_69 = arith.constant 0 : index
    %94 = vector.load %arg2[%93, %c0_69] : memref<16x128xf32, #tpu.memory_space<vmem>>, vector<1x128xf32>
    %c23_70 = arith.constant 23 : index
    %c0_71 = arith.constant 0 : index
    %95 = vector.load %arg3[%c23_70, %c0_71] : memref<32x128xf32, #tpu.memory_space<vmem>>, vector<1x128xf32>
    tpu.vector_store %arg3[%c23_70, %c0_71], %94 {strides = array<i32>} : memref<32x128xf32, #tpu.memory_space<vmem>>, vector<1x128xf32>,
    %c24 = arith.constant 24 : index
    %96 = memref.load %arg1[%c24] : memref<32xi32, #tpu.memory_space<smem>>
    %97 = arith.index_cast %96 : i32 to index
    %c0_72 = arith.constant 0 : index
    %98 = vector.load %arg2[%97, %c0_72] : memref<16x128xf32, #tpu.memory_space<vmem>>, vector<1x128xf32>
    %c24_73 = arith.constant 24 : index
    %c0_74 = arith.constant 0 : index
    %99 = vector.load %arg3[%c24_73, %c0_74] : memref<32x128xf32, #tpu.memory_space<vmem>>, vector<1x128xf32>
    tpu.vector_store %arg3[%c24_73, %c0_74], %98 {strides = array<i32>} : memref<32x128xf32, #tpu.memory_space<vmem>>, vector<1x128xf32>,
    %c25 = arith.constant 25 : index
    %100 = memref.load %arg1[%c25] : memref<32xi32, #tpu.memory_space<smem>>
    %101 = arith.index_cast %100 : i32 to index
    %c0_75 = arith.constant 0 : index
    %102 = vector.load %arg2[%101, %c0_75] : memref<16x128xf32, #tpu.memory_space<vmem>>, vector<1x128xf32>
    %c25_76 = arith.constant 25 : index
    %c0_77 = arith.constant 0 : index
    %103 = vector.load %arg3[%c25_76, %c0_77] : memref<32x128xf32, #tpu.memory_space<vmem>>, vector<1x128xf32>
    tpu.vector_store %arg3[%c25_76, %c0_77], %102 {strides = array<i32>} : memref<32x128xf32, #tpu.memory_space<vmem>>, vector<1x128xf32>,
    %c26 = arith.constant 26 : index
    %104 = memref.load %arg1[%c26] : memref<32xi32, #tpu.memory_space<smem>>
    %105 = arith.index_cast %104 : i32 to index
    %c0_78 = arith.constant 0 : index
    %106 = vector.load %arg2[%105, %c0_78] : memref<16x128xf32, #tpu.memory_space<vmem>>, vector<1x128xf32>
    %c26_79 = arith.constant 26 : index
    %c0_80 = arith.constant 0 : index
    %107 = vector.load %arg3[%c26_79, %c0_80] : memref<32x128xf32, #tpu.memory_space<vmem>>, vector<1x128xf32>
    tpu.vector_store %arg3[%c26_79, %c0_80], %106 {strides = array<i32>} : memref<32x128xf32, #tpu.memory_space<vmem>>, vector<1x128xf32>,
    %c27 = arith.constant 27 : index
    %108 = memref.load %arg1[%c27] : memref<32xi32, #tpu.memory_space<smem>>
    %109 = arith.index_cast %108 : i32 to index
    %c0_81 = arith.constant 0 : index
    %110 = vector.load %arg2[%109, %c0_81] : memref<16x128xf32, #tpu.memory_space<vmem>>, vector<1x128xf32>
    %c27_82 = arith.constant 27 : index
    %c0_83 = arith.constant 0 : index
    %111 = vector.load %arg3[%c27_82, %c0_83] : memref<32x128xf32, #tpu.memory_space<vmem>>, vector<1x128xf32>
    tpu.vector_store %arg3[%c27_82, %c0_83], %110 {strides = array<i32>} : memref<32x128xf32, #tpu.memory_space<vmem>>, vector<1x128xf32>,
    %c28 = arith.constant 28 : index
    %112 = memref.load %arg1[%c28] : memref<32xi32, #tpu.memory_space<smem>>
    %113 = arith.index_cast %112 : i32 to index
    %c0_84 = arith.constant 0 : index
    %114 = vector.load %arg2[%113, %c0_84] : memref<16x128xf32, #tpu.memory_space<vmem>>, vector<1x128xf32>
    %c28_85 = arith.constant 28 : index
    %c0_86 = arith.constant 0 : index
    %115 = vector.load %arg3[%c28_85, %c0_86] : memref<32x128xf32, #tpu.memory_space<vmem>>, vector<1x128xf32>
    tpu.vector_store %arg3[%c28_85, %c0_86], %114 {strides = array<i32>} : memref<32x128xf32, #tpu.memory_space<vmem>>, vector<1x128xf32>,
    %c29 = arith.constant 29 : index
    %116 = memref.load %arg1[%c29] : memref<32xi32, #tpu.memory_space<smem>>
    %117 = arith.index_cast %116 : i32 to index
    %c0_87 = arith.constant 0 : index
    %118 = vector.load %arg2[%117, %c0_87] : memref<16x128xf32, #tpu.memory_space<vmem>>, vector<1x128xf32>
    %c29_88 = arith.constant 29 : index
    %c0_89 = arith.constant 0 : index
    %119 = vector.load %arg3[%c29_88, %c0_89] : memref<32x128xf32, #tpu.memory_space<vmem>>, vector<1x128xf32>
    tpu.vector_store %arg3[%c29_88, %c0_89], %118 {strides = array<i32>} : memref<32x128xf32, #tpu.memory_space<vmem>>, vector<1x128xf32>,
    %c30 = arith.constant 30 : index
    %120 = memref.load %arg1[%c30] : memref<32xi32, #tpu.memory_space<smem>>
    %121 = arith.index_cast %120 : i32 to index
    %c0_90 = arith.constant 0 : index
    %122 = vector.load %arg2[%121, %c0_90] : memref<16x128xf32, #tpu.memory_space<vmem>>, vector<1x128xf32>
    %c30_91 = arith.constant 30 : index
    %c0_92 = arith.constant 0 : index
    %123 = vector.load %arg3[%c30_91, %c0_92] : memref<32x128xf32, #tpu.memory_space<vmem>>, vector<1x128xf32>
    tpu.vector_store %arg3[%c30_91, %c0_92], %122 {strides = array<i32>} : memref<32x128xf32, #tpu.memory_space<vmem>>, vector<1x128xf32>,
    %c31 = arith.constant 31 : index
    %124 = memref.load %arg1[%c31] : memref<32xi32, #tpu.memory_space<smem>>
    %125 = arith.index_cast %124 : i32 to index
    %c0_93 = arith.constant 0 : index
    %126 = vector.load %arg2[%125, %c0_93] : memref<16x128xf32, #tpu.memory_space<vmem>>, vector<1x128xf32>
    %c31_94 = arith.constant 31 : index
    %c0_95 = arith.constant 0 : index
    %127 = vector.load %arg3[%c31_94, %c0_95] : memref<32x128xf32, #tpu.memory_space<vmem>>, vector<1x128xf32>
    tpu.vector_store %arg3[%c31_94, %c0_95], %126 {strides = array<i32>} : memref<32x128xf32, #tpu.memory_space<vmem>>, vector<1x128xf32>,
    return
  }
  func.func @transform_0(%arg0: i32, %arg1: memref<32xi32, #tpu.memory_space<smem>>) -> (i32, i32) {
    %c0_i32 = arith.constant 0 : i32
    %c0_i32_0 = arith.constant 0 : i32
    %c0_i32_1 = arith.constant 0 : i32
    return %c0_i32, %c0_i32_0 : i32, i32
  }
  func.func @transform_1(%arg0: i32, %arg1: memref<32xi32, #tpu.memory_space<smem>>) -> (i32, i32) {
    %c0_i32 = arith.constant 0 : i32
    %c0_i32_0 = arith.constant 0 : i32
    %c0_i32_1 = arith.constant 0 : i32
    return %c0_i32, %c0_i32_0 : i32, i32
  }
}

</mosaic_0001>

<bundles_post_ra>
// kernel: tpu_custom_call.1
= control target key start
LH: loop header
LB: loop body
LE: loop exit
PB: predicated region body
PF: predicated region fallthrough
CT: control target
= control target key end

     0   :  { %s295_s9 = smov [#allocation3]   ;;  %s330_s0 = inlined_call_operand.hbm [shape: s32[32], index: 0, kind: input, shape index: {}]   ;;  %s331_s1 = inlined_call_operand.hbm [shape: f32[16,128], index: 1, kind: input, shape index: {}]   ;;  %s332_s2 = inlined_call_operand.hbm [shape: f32[32,128], index: 2, kind: output, shape index: {}]  }
   0x1   :  { %8 = dma.hbm_to_smem %s330_s0, 16, %s295_s9, [#allocation2] }
   0x2   :  { %289 = dma.done.wait [#allocation2], 16 }
   0x3   :  { %290 = vsyncadd [#allocation2], 4294967280 }
   0x4   :  { %10 = sfence }
   0x5   :  { %11 = vsyncpa [#allocation5], 0 }
   0x6   :  { %12 = vsyncpa [#allocation6], 0  ;;  %s296_s12 = smov [#allocation4]  }
   0x7   :  { %s18_s13 = sshll.u32 %s296_s12, 4  ;;  %s19_s13 = int_to_ptr.vmem [resolvable:$true] %s18_s13 }
   0x8   :  { %s257_s14 = scalar_lea.vmem %s19_s13, 256  ;;  %p262_p1 = scmp.lt.s32.totalorder %s19_s13, %s19_s13 }
   0x9   :  { %p258_p0 = scmp.ne.s32.totalorder %s19_s13, %s257_s14  ;;  %p263_p2 = scmp.lt.s32.totalorder %s257_s14, %s257_s14 }
   0xb   :  { %p264_p3 = por %p263_p2, %p262_p1 }
   0xd   :  { %p265_p4 = pnand %p264_p3, %p258_p0 }
   0xf   :  { %268 = shalt.err (!%p265_p4)
}
  0x10   :  { %s297_s15 = smov 128   ;;  %s298_s16 = smov 8  }
  0x11   :  { %24 = dma.hbm_to_vmem [thread:$0]  %s331_s1, 256, %s19_s13, [#allocation5], %s297_s15, %s297_s15, %s298_s16  }
  0x12   :  { %291 = dma.done.wait [#allocation5], 256  }
  0x13   :  { %292 = vsyncadd [#allocation5], 4294967040  ;;  %s28_s18 = sld [smem:[#allocation3]] }
  0x14   :  { %s205_s19 = sld [smem:[#allocation3 + $0x1]] }
  0x15   :  { %s206_s20 = sld [smem:[#allocation3 + $0x2]] }
  0x16   :  { %s207_s21 = sld [smem:[#allocation3 + $0x3]] }
  0x17   :  { %s208_s22 = sld [smem:[#allocation3 + $0x4]] }
  0x18   :  { %s209_s23 = sld [smem:[#allocation3 + $0x5]] }
  0x19   :  { %s210_s24 = sld [smem:[#allocation3 + $0x6]]  ;;  %s29_s25 = scalar_lea.vmem [#allocation4], %s28_s18 }
  0x1a   :  { %v30_v0 = vld [vmem:[%s29_s25] sm:$0x1]  ;;  %s211_s26 = sld [smem:[#allocation3 + $0x7]]  ;;  %s33_s27 = scalar_lea.vmem [#allocation4], %s205_s19 }
  0x1b   :  { %31 = vst [vmem:[#allocation7] sm:$0x1] %v30_v0  ;;  %v34_v1 = vld [vmem:[%s33_s27] sm:$0x1]  ;;  %s212_s28 = sld [smem:[#allocation3 + $0x8]]  ;;  %s37_s29 = scalar_lea.vmem [#allocation4], %s206_s20 }
  0x1c   :  { %35 = vst [vmem:[#allocation7 + $0x1] sm:$0x1] %v34_v1  ;;  %v38_v2 = vld [vmem:[%s37_s29] sm:$0x1]  ;;  %s213_s1 = sld [smem:[#allocation3 + $0x9]]  ;;  %s41_s30 = scalar_lea.vmem [#allocation4], %s207_s21 }
  0x1d   :  { %39 = vst [vmem:[#allocation7 + $0x2] sm:$0x1] %v38_v2  ;;  %v42_v3 = vld [vmem:[%s41_s30] sm:$0x1]  ;;  %s214_s3 = sld [smem:[#allocation3 + $0xa]]  ;;  %s45_s4 = scalar_lea.vmem [#allocation4], %s208_s22 }
  0x1e   :  { %43 = vst [vmem:[#allocation7 + $0x3] sm:$0x1] %v42_v3  ;;  %v46_v4 = vld [vmem:[%s45_s4] sm:$0x1]  ;;  %s215_s5 = sld [smem:[#allocation3 + $0xb]]  ;;  %s49_s6 = scalar_lea.vmem [#allocation4], %s209_s23 }
  0x1f   :  { %47 = vst [vmem:[#allocation7 + $0x4] sm:$0x1] %v46_v4  ;;  %v50_v5 = vld [vmem:[%s49_s6] sm:$0x1]  ;;  %s216_s7 = sld [smem:[#allocation3 + $0xc]]  ;;  %s53_s8 = scalar_lea.vmem [#allocation4], %s210_s24 }
  0x20   :  { %51 = vst [vmem:[#allocation7 + $0x5] sm:$0x1] %v50_v5  ;;  %v54_v6 = vld [vmem:[%s53_s8] sm:$0x1]  ;;  %s217_s9 = sld [smem:[#allocation3 + $0xd]]  ;;  %s57_s10 = scalar_lea.vmem [#allocation4], %s211_s26 }
  0x21   :  { %55 = vst [vmem:[#allocation7 + $0x6] sm:$0x1] %v54_v6  ;;  %v58_v7 = vld [vmem:[%s57_s10] sm:$0x1]  ;;  %s218_s11 = sld [smem:[#allocation3 + $0xe]]  ;;  %s61_s12 = scalar_lea.vmem [#allocation4], %s212_s28 }
  0x22   :  { %59 = vst [vmem:[#allocation7 + $0x7] sm:$0x1] %v58_v7  ;;  %v62_v8 = vld [vmem:[%s61_s12] sm:$0x1]  ;;  %s219_s13 = sld [smem:[#allocation3 + $0xf]]  ;;  %s65_s14 = scalar_lea.vmem [#allocation4], %s213_s1 }
  0x23   :  { %63 = vst [vmem:[#allocation7 + $0x8] sm:$0x1] %v62_v8  ;;  %v66_v9 = vld [vmem:[%s65_s14] sm:$0x1]  ;;  %s220_s0 = sld [smem:[#allocation3 + $0x10]]  ;;  %s69_s17 = scalar_lea.vmem [#allocation4], %s214_s3 }
  0x24   :  { %67 = vst [vmem:[#allocation7 + $0x9] sm:$0x1] %v66_v9  ;;  %v70_v10 = vld [vmem:[%s69_s17] sm:$0x1]  ;;  %s221_s18 = sld [smem:[#allocation3 + $0x11]]  ;;  %s73_s19 = scalar_lea.vmem [#allocation4], %s215_s5 }
  0x25   :  { %71 = vst [vmem:[#allocation7 + $0xa] sm:$0x1] %v70_v10  ;;  %v74_v11 = vld [vmem:[%s73_s19] sm:$0x1]  ;;  %s222_s20 = sld [smem:[#allocation3 + $0x12]]  ;;  %s77_s21 = scalar_lea.vmem [#allocation4], %s216_s7 }
  0x26   :  { %75 = vst [vmem:[#allocation7 + $0xb] sm:$0x1] %v74_v11  ;;  %v78_v12 = vld [vmem:[%s77_s21] sm:$0x1]  ;;  %s223_s22 = sld [smem:[#allocation3 + $0x13]]  ;;  %s81_s23 = scalar_lea.vmem [#allocation4], %s217_s9 }
  0x27   :  { %79 = vst [vmem:[#allocation7 + $0xc] sm:$0x1] %v78_v12  ;;  %v82_v13 = vld [vmem:[%s81_s23] sm:$0x1]  ;;  %s224_s24 = sld [smem:[#allocation3 + $0x14]]  ;;  %s85_s25 = scalar_lea.vmem [#allocation4], %s218_s11 }
  0x28   :  { %83 = vst [vmem:[#allocation7 + $0xd] sm:$0x1] %v82_v13  ;;  %v86_v14 = vld [vmem:[%s85_s25] sm:$0x1]  ;;  %s225_s26 = sld [smem:[#allocation3 + $0x15]]  ;;  %s89_s27 = scalar_lea.vmem [#allocation4], %s219_s13 }
  0x29   :  { %87 = vst [vmem:[#allocation7 + $0xe] sm:$0x1] %v86_v14  ;;  %v90_v15 = vld [vmem:[%s89_s27] sm:$0x1]  ;;  %s226_s28 = sld [smem:[#allocation3 + $0x16]]  ;;  %s93_s29 = scalar_lea.vmem [#allocation4], %s220_s0 }
  0x2a   :  { %91 = vst [vmem:[#allocation7 + $0xf] sm:$0x1] %v90_v15  ;;  %v94_v16 = vld [vmem:[%s93_s29] sm:$0x1]  ;;  %s227_s1 = sld [smem:[#allocation3 + $0x17]]  ;;  %s97_s30 = scalar_lea.vmem [#allocation4], %s221_s18 }
  0x2b   :  { %95 = vst [vmem:[#allocation7 + $0x10] sm:$0x1] %v94_v16  ;;  %v98_v17 = vld [vmem:[%s97_s30] sm:$0x1]  ;;  %s228_s3 = sld [smem:[#allocation3 + $0x18]]  ;;  %s101_s4 = scalar_lea.vmem [#allocation4], %s222_s20 }
  0x2c   :  { %99 = vst [vmem:[#allocation7 + $0x11] sm:$0x1] %v98_v17  ;;  %v102_v18 = vld [vmem:[%s101_s4] sm:$0x1]  ;;  %s229_s5 = sld [smem:[#allocation3 + $0x19]]  ;;  %s105_s6 = scalar_lea.vmem [#allocation4], %s223_s22 }
  0x2d   :  { %103 = vst [vmem:[#allocation7 + $0x12] sm:$0x1] %v102_v18  ;;  %v106_v19 = vld [vmem:[%s105_s6] sm:$0x1]  ;;  %s230_s7 = sld [smem:[#allocation3 + $0x1a]]  ;;  %s109_s8 = scalar_lea.vmem [#allocation4], %s224_s24 }
  0x2e   :  { %107 = vst [vmem:[#allocation7 + $0x13] sm:$0x1] %v106_v19  ;;  %v110_v20 = vld [vmem:[%s109_s8] sm:$0x1]  ;;  %s231_s9 = sld [smem:[#allocation3 + $0x1b]]  ;;  %s113_s10 = scalar_lea.vmem [#allocation4], %s225_s26 }
  0x2f   :  { %111 = vst [vmem:[#allocation7 + $0x14] sm:$0x1] %v110_v20  ;;  %v114_v21 = vld [vmem:[%s113_s10] sm:$0x1]  ;;  %s232_s11 = sld [smem:[#allocation3 + $0x1c]]  ;;  %s117_s12 = scalar_lea.vmem [#allocation4], %s226_s28 }
  0x30   :  { %115 = vst [vmem:[#allocation7 + $0x15] sm:$0x1] %v114_v21  ;;  %v118_v22 = vld [vmem:[%s117_s12] sm:$0x1]  ;;  %s233_s13 = sld [smem:[#allocation3 + $0x1d]]  ;;  %s121_s14 = scalar_lea.vmem [#allocation4], %s227_s1 }
  0x31   :  { %119 = vst [vmem:[#allocation7 + $0x16] sm:$0x1] %v118_v22  ;;  %v122_v23 = vld [vmem:[%s121_s14] sm:$0x1]  ;;  %s234_s0 = sld [smem:[#allocation3 + $0x1e]]  ;;  %s125_s17 = scalar_lea.vmem [#allocation4], %s228_s3 }
  0x32   :  { %123 = vst [vmem:[#allocation7 + $0x17] sm:$0x1] %v122_v23  ;;  %v126_v24 = vld [vmem:[%s125_s17] sm:$0x1]  ;;  %s235_s18 = sld [smem:[#allocation3 + $0x1f]]  ;;  %s129_s19 = scalar_lea.vmem [#allocation4], %s229_s5 }
  0x33   :  { %127 = vst [vmem:[#allocation7 + $0x18] sm:$0x1] %v126_v24  ;;  %v130_v25 = vld [vmem:[%s129_s19] sm:$0x1]  ;;  %s133_s20 = scalar_lea.vmem [#allocation4], %s230_s7  ;;  %s299_s22 = smov [#allocation7]  }
  0x34   :  { %131 = vst [vmem:[#allocation7 + $0x19] sm:$0x1] %v130_v25  ;;  %v134_v26 = vld [vmem:[%s133_s20] sm:$0x1]  ;;  %s137_s21 = scalar_lea.vmem [#allocation4], %s231_s9  ;;  %s161_s23 = sshll.u32 %s299_s22, 4  ;;  %s162_s23 = int_to_ptr.vmem [resolvable:$true] %s161_s23 }
  0x35   :  { %135 = vst [vmem:[#allocation7 + $0x1a] sm:$0x1] %v134_v26  ;;  %v138_v27 = vld [vmem:[%s137_s21] sm:$0x1]  ;;  %s141_s24 = scalar_lea.vmem [#allocation4], %s232_s11  ;;  %s269_s28 = scalar_lea.vmem %s162_s23, 512 }
  0x36   :  { %139 = vst [vmem:[#allocation7 + $0x1b] sm:$0x1] %v138_v27  ;;  %v142_v28 = vld [vmem:[%s141_s24] sm:$0x1]  ;;  %s145_s25 = scalar_lea.vmem [#allocation4], %s233_s13  ;;  %p270_p5 = scmp.ne.s32.totalorder %s162_s23, %s269_s28 }
  0x37   :  { %143 = vst [vmem:[#allocation7 + $0x1c] sm:$0x1] %v142_v28  ;;  %v146_v29 = vld [vmem:[%s145_s25] sm:$0x1]  ;;  %s149_s26 = scalar_lea.vmem [#allocation4], %s234_s0  ;;  %p274_p6 = scmp.lt.s32.totalorder %s162_s23, %s162_s23 }
  0x38   :  { %147 = vst [vmem:[#allocation7 + $0x1d] sm:$0x1] %v146_v29  ;;  %v150_v30 = vld [vmem:[%s149_s26] sm:$0x1]  ;;  %s153_s27 = scalar_lea.vmem [#allocation4], %s235_s18  ;;  %p275_p7 = scmp.lt.s32.totalorder %s269_s28, %s269_s28 }
  0x39   :  { %151 = vst [vmem:[#allocation7 + $0x1e] sm:$0x1] %v150_v30  ;;  %v154_v31 = vld [vmem:[%s153_s27] sm:$0x1] }
  0x3a   :  { %155 = vst [vmem:[#allocation7 + $0x1f] sm:$0x1] %v154_v31  ;;  %p276_p8 = por %p275_p7, %p274_p6 }
  0x3c   :  { %p277_p9 = pnand %p276_p8, %p270_p5 }
  0x3e   :  { %280 = shalt.err (!%p277_p9)
}
  0x3f   :  { %167 = dma.vmem_to_hbm [thread:$0]  %s162_s23, 512, %s332_s2, [#allocation6], %s297_s15, %s297_s15, %s298_s16  }
  0x40   :  { %293 = dma.done.wait [#allocation6], 512  }
  0x41   :  { %294 = vsyncadd [#allocation6], 4294966784 }
  0x42   :  { %171 = vsyncpa [#allocation5], 1 }
  0x43   :  { %172 = vsyncpa [#allocation6], 1 }

</bundles_post_ra>
